<compile_context>
chip_gen: v6e
topology: v6e:2x2x1
jax: 0.10.0
libtpu: 0.0.40
codegen_flags: <defaults>
</compile_context>

<pallas_src>
import jax
import jax.numpy as jnp
from jax.experimental import pallas as pl
from jax.experimental.pallas import tpu as pltpu


def _round_up(x: int, m: int) -> int:
    return ((x + m - 1) // m) * m


def _onehot_encoder_kernel(x_ref, w_ref, b_ref, o_ref):
    # MXU matmul with f32 accumulation; bias broadcast-add on the VPU.
    acc = jnp.dot(x_ref[...], w_ref[...], preferred_element_type=jnp.float32)  # (TB, TE) f32
    o_ref[...] = acc + b_ref[...]


def one_hot_encoder_forward(
    x,
    weight,
    bias,
    n_attributes,
    n_values,
    *,
    block_b=1024,
    max_block_e=1024,       # multiple of 128; caps the resident weight slab per step
    min_pallas_batch=64,    # below this, plain XLA dot beats kernel launch overhead
    assume_onehot=True,     # bf16 activations are exact only for {0,1}-valued x
):
    """x: (B, n_attributes, n_values) any float/int dtype.
    weight: (F, E) float32 (PyTorch Linear.weight transposed), bias: (E,) float32.
    Returns (B, E) float32 embedding."""
    B = x.shape[0]
    F = n_attributes * n_values
    E = weight.shape[1]

    # --- wrapper glue: reshape (matches x.reshape(B, A*V)) ---
    x_flat = x.reshape(B, F)

    # Tiny-shape fast path: a grid of ~1 step is pure launch/per-step overhead.
    if B < min_pallas_batch:
        return x_flat.astype(jnp.float32) @ weight.astype(jnp.float32) + bias.astype(jnp.float32)

    # Single cast source -> compute dtype (no f32 intermediate materialized in HBM).
    compute_dtype = jnp.bfloat16 if assume_onehot else jnp.float32
    x_c = x_flat.astype(compute_dtype)
    w_c = weight.astype(compute_dtype)
    b2d = bias.astype(jnp.float32).reshape(1, E)

    # Batch tile: large (HBM-roofline regime), multiple of 16 for bf16 sublane packing.
    TB = min(block_b, _round_up(B, 16))
    # E tile: full E when it fits, else 1024-wide lane-dense slabs (v7x VMEM guard).
    TE = E if E <= max_block_e else max_block_e

    grid = (pl.cdiv(B, TB), pl.cdiv(E, TE))  # ragged last blocks handled by Pallas (masked writes)

    itemsize = jnp.dtype(compute_dtype).itemsize
    # Double-buffered VMEM footprint per core (weight has a constant-per-column-tile
    # index map so its DMA is issued once per E tile, but budget 2 buffers anyway).
    buf_bytes = 2 * (TB * F * itemsize + F * TE * itemsize + TE * 4 + TB * TE * 4)
    vmem_limit = min(64 * 1024 * 1024, max(2 * buf_bytes, 4 * 1024 * 1024))

    cost = pl.CostEstimate(
        flops=2 * B * F * E,
        transcendentals=0,
        bytes_accessed=itemsize * (B * F + F * E) + 4 * (B * E + E),
    )

    out = pl.pallas_call(
        _onehot_encoder_kernel,
        out_shape=jax.ShapeDtypeStruct((B, E), jnp.float32),
        grid_spec=pl.GridSpec(
            grid=grid,
            in_specs=[
                pl.BlockSpec((TB, F), lambda i, j: (i, 0)),   # x: streamed per batch tile
                pl.BlockSpec((F, TE), lambda i, j: (0, j)),   # weight: resident per E tile
                pl.BlockSpec((1, TE), lambda i, j: (0, j)),   # bias: resident per E tile
            ],
            out_specs=pl.BlockSpec((TB, TE), lambda i, j: (i, j)),
        ),
        compiler_params=pltpu.CompilerParams(
            # Megacore (v7x) shards independent batch/E tiles across TCs; no-op on v5e/v6e.
            dimension_semantics=("parallel", "parallel"),
            vmem_limit_bytes=vmem_limit,
        ),
        cost_estimate=cost,
    )(x_c, w_c, b2d)

    # TODO(synk): highest-leverage variant would take (B, n_attributes) int32 indices and
    # build the one-hot in-kernel (broadcasted_iota == idx), removing x HBM traffic entirely.
    return out


if __name__ == "__main__":
    # Module config (small, consistent with the forward pass).
    object_params = {"n_values": 8, "n_attributes": 4}
    embedding_size = 32

    n_values = object_params["n_values"]
    n_attributes = object_params["n_attributes"]
    F = n_values * n_attributes  # 32
    E = embedding_size           # 32

    key = jax.random.PRNGKey(0)
    k_x1, k_x2, k_w, k_b, k_sos = jax.random.split(key, 5)

    # Deterministic parameter init (synthetic; shapes match nn.Linear(F, E)).
    # PyTorch Linear.weight is (E, F); we store its transpose (F, E) for the kernel.
    bound = F ** -0.5
    weight = jax.random.uniform(k_w, (F, E), jnp.float32, -bound, bound)
    bias = jax.random.uniform(k_b, (E,), jnp.float32, -bound, bound)
    # sos_embedding ~ N(0, 1): unused in forward(), created for parity.
    sos_embedding = jax.random.normal(k_sos, (E,), jnp.float32)

    # --- Kernel path: batch large enough to bypass the tiny-shape fast path and to
    # exercise the ragged (non-divisible) last batch block without any jnp.pad. ---
    B1 = 200
    idx1 = jax.random.randint(k_x1, (B1, n_attributes), 0, n_values)
    x1 = jax.nn.one_hot(idx1, n_values, dtype=jnp.float32)  # (B1, A, V)
    out1 = jax.block_until_ready(
        one_hot_encoder_forward(x1, weight, bias, n_attributes, n_values)
    )
    ref1 = x1.reshape(B1, F) @ weight + bias
    assert out1.shape == (B1, E)
    # bf16 weight rounding only (one-hot activations exact in bf16).
    assert jnp.allclose(out1, ref1, atol=1e-2, rtol=1e-2), float(jnp.max(jnp.abs(out1 - ref1)))

    # --- Tiny-shape fast path (plain XLA dot, exact f32). ---
    B2 = 8
    idx2 = jax.random.randint(k_x2, (B2, n_attributes), 0, n_values)
    x2 = jax.nn.one_hot(idx2, n_values, dtype=jnp.float32)
    out2 = jax.block_until_ready(
        one_hot_encoder_forward(x2, weight, bias, n_attributes, n_values)
    )
    ref2 = x2.reshape(B2, F) @ weight + bias
    assert out2.shape == (B2, E)
    assert jnp.allclose(out2, ref2, atol=1e-5, rtol=1e-5), float(jnp.max(jnp.abs(out2 - ref2)))

    print("KERNEL_OK")
</pallas_src>

<mosaic_0001>
module attributes {stable_mosaic.version = 11 : i64} {
  func.func @_onehot_encoder_kernel(%arg0: i32, %arg1: i32, %arg2: memref<208x32xbf16, #tpu.memory_space<vmem>>, %arg3: memref<32x32xbf16, #tpu.memory_space<vmem>>, %arg4: memref<1x32xf32, #tpu.memory_space<vmem>>, %arg5: memref<208x32xf32, #tpu.memory_space<vmem>>) attributes {dimension_semantics = [#tpu.dimension_semantics<parallel>, #tpu.dimension_semantics<parallel>], iteration_bounds = array<i64: 1, 1>, scalar_prefetch = 0 : i64, scratch_operands = 0 : i64, tpu.core_type = #tpu.core_type<tc>, window_params = [{transform_indices = @transform_0, window_bounds = array<i64: 208, 32>}, {transform_indices = @transform_1, window_bounds = array<i64: 32, 32>}, {transform_indices = @transform_2, window_bounds = array<i64: 1, 32>}, {transform_indices = @transform_3, window_bounds = array<i64: 208, 32>}]} {
    %c0 = arith.constant 0 : index
    %c0_0 = arith.constant 0 : index
    %0 = vector.load %arg2[%c0, %c0_0] : memref<208x32xbf16, #tpu.memory_space<vmem>>, vector<208x32xbf16>
    %c0_1 = arith.constant 0 : index
    %c0_2 = arith.constant 0 : index
    %1 = vector.load %arg3[%c0_1, %c0_2] : memref<32x32xbf16, #tpu.memory_space<vmem>>, vector<32x32xbf16>
    %cst = arith.constant dense<0.000000e+00> : vector<208x32xf32>
    %2 = tpu.matmul %0, %1, %cst {dimension_numbers = #tpu.dot_dimension_numbers<[1], [0], [0], [1], [0, 0, 1, 1], [], []>} : vector<208x32xbf16>, vector<32x32xbf16>, vector<208x32xf32> -> vector<208x32xf32>
    %c0_3 = arith.constant 0 : index
    %c0_4 = arith.constant 0 : index
    %3 = vector.load %arg4[%c0_3, %c0_4] : memref<1x32xf32, #tpu.memory_space<vmem>>, vector<1x32xf32>
    %4 = vector.broadcast %3 : vector<1x32xf32> to vector<208x32xf32>
    %5 = arith.addf %2, %4 : vector<208x32xf32>
    %c0_5 = arith.constant 0 : index
    %c0_6 = arith.constant 0 : index
    %6 = vector.load %arg5[%c0_5, %c0_6] : memref<208x32xf32, #tpu.memory_space<vmem>>, vector<208x32xf32>
    tpu.vector_store %arg5[%c0_5, %c0_6], %5 {strides = array<i32>} : memref<208x32xf32, #tpu.memory_space<vmem>>, vector<208x32xf32>,
    return
  }
  func.func @transform_0(%arg0: i32, %arg1: i32) -> (i32, i32) {
    %c0_i32 = arith.constant 0 : i32
    %c0_i32_0 = arith.constant 0 : i32
    return %arg0, %c0_i32 : i32, i32
  }
  func.func @transform_1(%arg0: i32, %arg1: i32) -> (i32, i32) {
    %c0_i32 = arith.constant 0 : i32
    %c0_i32_0 = arith.constant 0 : i32
    return %c0_i32, %arg1 : i32, i32
  }
  func.func @transform_2(%arg0: i32, %arg1: i32) -> (i32, i32) {
    %c0_i32 = arith.constant 0 : i32
    %c0_i32_0 = arith.constant 0 : i32
    return %c0_i32, %arg1 : i32, i32
  }
  func.func @transform_3(%arg0: i32, %arg1: i32) -> (i32, i32) {
    %c0_i32 = arith.constant 0 : i32
    return %arg0, %arg1 : i32, i32
  }
}

</mosaic_0001>

<bundles_post_ra>
// kernel: tpu_custom_call.1
= control target key start
LH: loop header
LB: loop body
LE: loop exit
PB: predicated region body
PF: predicated region fallthrough
CT: control target
= control target key end

     0   :  { %v590_v1 = vmov 0.0   ;;  %vm591_vm0 = vmmov 0   ;;  %vm129_vm1 = vcmask 261120   ;;  %s813_s0 = inlined_call_operand.vmem [shape: bf16[200,32], index: 0, kind: input, shape index: {}]   ;;  %s814_s1 = inlined_call_operand.vmem [shape: bf16[32,32], index: 1, kind: input, shape index: {}]   ;;  %s815_s2 = inlined_call_operand.vmem [shape: f32[1,32], index: 2, kind: input, shape index: {}]   ;;  %s816_s3 = inlined_call_operand.vmem [shape: f32[200,32], index: 3, kind: output, shape index: {}]  }
   0x1   :  { %v575_v0 = vld [vmem:[%s814_s1 + $0x8] sm:$0xff]   ;;  %513 = vmatprep.subr.bf16.mxu0 %v590_v1  ;;  %569 = vmatprep.subr.bf16.mxu1 %v590_v1  ;;  %v576_v2 = vld [vmem:[%s814_s1] sm:$0xff]   ;;  %v578_v4 = vld [vmem:[%s813_s0 + $0x38] sm:$0xff]  }
   0x2   :  { %514 = vmatpush3.bf16.msra.mxu0 %v575_v0  ;;  %571 = vmatpush3.bf16.msra.mxu1 %v575_v0  ;;  %v577_v3 = vld [vmem:[%s813_s0] sm:$0xff]   ;;  %v579_v5 = vld [vmem:[%s813_s0 + $0x8] sm:$0xff]   ;;  %v581_v7 = vld [vmem:[%s813_s0 + $0x10] sm:$0xff]  }
   0x3   :  { %515 = vmatprep.subr.bf16.mxu0 %v590_v1  ;;  %517 = vmatprep.mubr.msk.bf16.mxu0 %vm591_vm0, %v590_v1  ;;  %v580_v6 = vld [vmem:[%s813_s0 + $0x40] sm:$0xff]   ;;  %v582_v8 = vld [vmem:[%s813_s0 + $0x48] sm:$0xff]   ;;  %v583_v9 = vld [vmem:[%s813_s0 + $0x18] sm:$0xff]  }
   0x4   :  { %570 = vmatprep.subr.bf16.mxu1 %v590_v1  ;;  %545 = vmatprep.mubr.msk.bf16.mxu1 %vm591_vm0, %v590_v1  ;;  %v584_v10 = vld [vmem:[%s813_s0 + $0x50] sm:$0xff]   ;;  %v585_v11 = vld [vmem:[%s813_s0 + $0x20] sm:$0xff]   ;;  %v586_v12 = vld [vmem:[%s813_s0 + $0x58] sm:$0xff]  }
   0x5   :  { %v587_v13 = vld [vmem:[%s813_s0 + $0x28] sm:$0xff]   ;;  %v588_v14 = vld [vmem:[%s813_s0 + $0x60] sm:$0xff]   ;;  %v589_v15 = vld [vmem:[%s813_s0 + $0x30] sm:$0xff]  }
   0x6   :  { %516 = vmatpush3.bf16.msra.mxu0 %v576_v2  ;;  %572 = vmatpush3.bf16.msra.mxu1 %v576_v2  ;;  %v686_v16 = vld [vmem:[%s815_s2] ss:$0 sm:$0xff] }
   0x9   :  { %518 = vmatmul.mubr.msk.bf16.vlgmr.msra.gmra.mxu0 %vm129_vm1, %v577_v3  ;;  %546 = vmatmul.mubr.msk.bf16.vlgmr.msra.gmra.mxu1 %vm129_vm1, %v578_v4 }
   0xa   :  { %521 = vmatprep.mubr.msk.bf16.mxu0 %vm591_vm0, %v590_v1  ;;  %549 = vmatprep.mubr.msk.bf16.mxu1 %vm591_vm0, %v590_v1 }
  0x11   :  { %522 = vmatmul.mubr.msk.bf16.gmra.mxu0 %vm129_vm1, %v579_v5  ;;  %550 = vmatmul.mubr.msk.bf16.gmra.mxu1 %vm129_vm1, %v580_v6 }
  0x12   :  { %525 = vmatprep.mubr.msk.bf16.mxu0 %vm591_vm0, %v590_v1  ;;  %553 = vmatprep.mubr.msk.bf16.mxu1 %vm591_vm0, %v590_v1 }
  0x19   :  { %526 = vmatmul.mubr.msk.bf16.gmra.mxu0 %vm129_vm1, %v581_v7  ;;  %554 = vmatmul.mubr.msk.bf16.gmra.mxu1 %vm129_vm1, %v582_v8 }
  0x1a   :  { %529 = vmatprep.mubr.msk.bf16.mxu0 %vm591_vm0, %v590_v1  ;;  %557 = vmatprep.mubr.msk.bf16.mxu1 %vm591_vm0, %v590_v1 }
  0x21   :  { %530 = vmatmul.mubr.msk.bf16.gmra.mxu0 %vm129_vm1, %v583_v9  ;;  %558 = vmatmul.mubr.msk.bf16.gmra.mxu1 %vm129_vm1, %v584_v10 }
  0x22   :  { %533 = vmatprep.mubr.msk.bf16.mxu0 %vm591_vm0, %v590_v1  ;;  %561 = vmatprep.mubr.msk.bf16.mxu1 %vm591_vm0, %v590_v1 }
  0x29   :  { %534 = vmatmul.mubr.msk.bf16.gmra.mxu0 %vm129_vm1, %v585_v11  ;;  %562 = vmatmul.mubr.msk.bf16.gmra.mxu1 %vm129_vm1, %v586_v12 }
  0x2a   :  { %537 = vmatprep.mubr.msk.bf16.mxu0 %vm591_vm0, %v590_v1  ;;  %565 = vmatprep.mubr.msk.bf16.mxu1 %vm591_vm0, %v590_v1 }
  0x31   :  { %538 = vmatmul.mubr.msk.bf16.gmra.mxu0 %vm129_vm1, %v587_v13  ;;  %566 = vmatmul.mubr.msk.bf16.gmra.mxu1 %vm129_vm1, %v588_v14 }
  0x32   :  { %541 = vmatprep.mubr.msk.bf16.mxu0 %vm591_vm0, %v590_v1 }
  0x39   :  { %542 = vmatmul.mubr.msk.bf16.gmra.mxu0 %vm129_vm1, %v589_v15 }
  0xc9   :  { %v203_v17 = vpop.f32.mrf.mxu0  ;;  %v259_v18 = vpop.f32.mrf.mxu1 }
  0xca   :  { %v204_v19 = vadd.f32 %v686_v16, %v203_v17  ;;  %v260_v20 = vadd.f32 %v686_v16, %v259_v18 }
  0xcb   :  { %v519_v21 = vpop.f32.mrf.mxu0  ;;  %v547_v22 = vpop.f32.mrf.mxu1 }
  0xcc   :  { %306 = vst.msk [vmem:[#allocation2] sm:$0xff] %vm129_vm1, %v204_v19  ;;  %320 = vst.msk [vmem:[#allocation2 + $0x70] sm:$0xff] %vm129_vm1, %v260_v20 }
  0xcd   :  { %v206_v23 = vpop.f32.mrf.mxu0  ;;  %v262_v24 = vpop.f32.mrf.mxu1 }
  0xce   :  { %v207_v25 = vadd.f32 %v686_v16, %v206_v23  ;;  %v263_v26 = vadd.f32 %v686_v16, %v262_v24 }
  0xcf   :  { %v520_v27 = vpop.f32.mrf.mxu0  ;;  %v548_v28 = vpop.f32.mrf.mxu1 }
  0xd0   :  { %307 = vst.msk [vmem:[#allocation2 + $0x8] sm:$0xff] %vm129_vm1, %v207_v25  ;;  %321 = vst.msk [vmem:[#allocation2 + $0x78] sm:$0xff] %vm129_vm1, %v263_v26 }
  0xd1   :  { %v211_v29 = vpop.f32.mrf.mxu0  ;;  %v267_v30 = vpop.f32.mrf.mxu1 }
  0xd2   :  { %v212_v31 = vadd.f32 %v686_v16, %v211_v29  ;;  %v268_v32 = vadd.f32 %v686_v16, %v267_v30 }
  0xd3   :  { %v410_v33 = vld [vmem:[#allocation2] sm:$0xff]  ;;  %v438_v34 = vld [vmem:[#allocation2 + $0x70] sm:$0xff]  ;;  %v523_v35 = vpop.f32.mrf.mxu0  ;;  %v551_v36 = vpop.f32.mrf.mxu1 }
  0xd4   :  { %411 = vst [vmem:[%s816_s3] sm:$0xff] %v410_v33  ;;  %439 = vst [vmem:[%s816_s3 + $0x70] sm:$0xff] %v438_v34 }
  0xd5   :  { %308 = vst.msk [vmem:[#allocation2 + $0x10] sm:$0xff] %vm129_vm1, %v212_v31  ;;  %322 = vst.msk [vmem:[#allocation2 + $0x80] sm:$0xff] %vm129_vm1, %v268_v32  ;;  %v214_v37 = vpop.f32.mrf.mxu0  ;;  %v270_v38 = vpop.f32.mrf.mxu1 }
  0xd6   :  { %v215_v39 = vadd.f32 %v686_v16, %v214_v37  ;;  %v271_v40 = vadd.f32 %v686_v16, %v270_v38 }
  0xd7   :  { %v412_v41 = vld [vmem:[#allocation2 + $0x8] sm:$0xff]  ;;  %v440_v42 = vld [vmem:[#allocation2 + $0x78] sm:$0xff]  ;;  %v524_v43 = vpop.f32.mrf.mxu0  ;;  %v552_v44 = vpop.f32.mrf.mxu1 }
  0xd8   :  { %413 = vst [vmem:[%s816_s3 + $0x8] sm:$0xff] %v412_v41  ;;  %441 = vst [vmem:[%s816_s3 + $0x78] sm:$0xff] %v440_v42 }
  0xd9   :  { %309 = vst.msk [vmem:[#allocation2 + $0x18] sm:$0xff] %vm129_vm1, %v215_v39  ;;  %323 = vst.msk [vmem:[#allocation2 + $0x88] sm:$0xff] %vm129_vm1, %v271_v40  ;;  %v219_v45 = vpop.f32.mrf.mxu0  ;;  %v275_v46 = vpop.f32.mrf.mxu1 }
  0xda   :  { %v220_v47 = vadd.f32 %v686_v16, %v219_v45  ;;  %v276_v48 = vadd.f32 %v686_v16, %v275_v46 }
  0xdb   :  { %v527_v51 = vpop.f32.mrf.mxu0  ;;  %v555_v52 = vpop.f32.mrf.mxu1 }
  0xdc   :  { %v414_v49 = vld [vmem:[#allocation2 + $0x10] sm:$0xff]  ;;  %v442_v50 = vld [vmem:[#allocation2 + $0x80] sm:$0xff]  ;;  %310 = vst.msk [vmem:[#allocation2 + $0x20] sm:$0xff] %vm129_vm1, %v220_v47  ;;  %324 = vst.msk [vmem:[#allocation2 + $0x90] sm:$0xff] %vm129_vm1, %v276_v48 }
  0xdd   :  { %415 = vst [vmem:[%s816_s3 + $0x10] sm:$0xff] %v414_v49  ;;  %443 = vst [vmem:[%s816_s3 + $0x80] sm:$0xff] %v442_v50  ;;  %v222_v53 = vpop.f32.mrf.mxu0  ;;  %v278_v54 = vpop.f32.mrf.mxu1 }
  0xde   :  { %v223_v55 = vadd.f32 %v686_v16, %v222_v53  ;;  %v279_v56 = vadd.f32 %v686_v16, %v278_v54 }
  0xdf   :  { %v528_v59 = vpop.f32.mrf.mxu0  ;;  %v556_v60 = vpop.f32.mrf.mxu1 }
  0xe0   :  { %v416_v57 = vld [vmem:[#allocation2 + $0x18] sm:$0xff]  ;;  %v444_v58 = vld [vmem:[#allocation2 + $0x88] sm:$0xff]  ;;  %311 = vst.msk [vmem:[#allocation2 + $0x28] sm:$0xff] %vm129_vm1, %v223_v55  ;;  %325 = vst.msk [vmem:[#allocation2 + $0x98] sm:$0xff] %vm129_vm1, %v279_v56 }
  0xe1   :  { %417 = vst [vmem:[%s816_s3 + $0x18] sm:$0xff] %v416_v57  ;;  %445 = vst [vmem:[%s816_s3 + $0x88] sm:$0xff] %v444_v58  ;;  %v227_v61 = vpop.f32.mrf.mxu0  ;;  %v283_v62 = vpop.f32.mrf.mxu1 }
  0xe2   :  { %v228_v63 = vadd.f32 %v686_v16, %v227_v61  ;;  %v284_v0 = vadd.f32 %v686_v16, %v283_v62 }
  0xe3   :  { %v418_v1 = vld [vmem:[#allocation2 + $0x20] sm:$0xff]  ;;  %v446_v2 = vld [vmem:[#allocation2 + $0x90] sm:$0xff]  ;;  %v531_v3 = vpop.f32.mrf.mxu0  ;;  %v559_v4 = vpop.f32.mrf.mxu1 }
  0xe4   :  { %419 = vst [vmem:[%s816_s3 + $0x20] sm:$0xff] %v418_v1  ;;  %447 = vst [vmem:[%s816_s3 + $0x90] sm:$0xff] %v446_v2 }
  0xe5   :  { %312 = vst.msk [vmem:[#allocation2 + $0x30] sm:$0xff] %vm129_vm1, %v228_v63  ;;  %326 = vst.msk [vmem:[#allocation2 + $0xa0] sm:$0xff] %vm129_vm1, %v284_v0  ;;  %v230_v5 = vpop.f32.mrf.mxu0  ;;  %v286_v6 = vpop.f32.mrf.mxu1 }
  0xe6   :  { %v231_v7 = vadd.f32 %v686_v16, %v230_v5  ;;  %v287_v8 = vadd.f32 %v686_v16, %v286_v6 }
  0xe7   :  { %v420_v9 = vld [vmem:[#allocation2 + $0x28] sm:$0xff]  ;;  %v448_v10 = vld [vmem:[#allocation2 + $0x98] sm:$0xff]  ;;  %v532_v11 = vpop.f32.mrf.mxu0  ;;  %v560_v12 = vpop.f32.mrf.mxu1 }
  0xe8   :  { %421 = vst [vmem:[%s816_s3 + $0x28] sm:$0xff] %v420_v9  ;;  %449 = vst [vmem:[%s816_s3 + $0x98] sm:$0xff] %v448_v10 }
  0xe9   :  { %313 = vst.msk [vmem:[#allocation2 + $0x38] sm:$0xff] %vm129_vm1, %v231_v7  ;;  %327 = vst.msk [vmem:[#allocation2 + $0xa8] sm:$0xff] %vm129_vm1, %v287_v8  ;;  %v235_v13 = vpop.f32.mrf.mxu0  ;;  %v291_v14 = vpop.f32.mrf.mxu1 }
  0xea   :  { %v236_v15 = vadd.f32 %v686_v16, %v235_v13  ;;  %v292_v17 = vadd.f32 %v686_v16, %v291_v14 }
  0xeb   :  { %v535_v20 = vpop.f32.mrf.mxu0  ;;  %v563_v21 = vpop.f32.mrf.mxu1 }
  0xec   :  { %v422_v18 = vld [vmem:[#allocation2 + $0x30] sm:$0xff]  ;;  %v450_v19 = vld [vmem:[#allocation2 + $0xa0] sm:$0xff]  ;;  %314 = vst.msk [vmem:[#allocation2 + $0x40] sm:$0xff] %vm129_vm1, %v236_v15  ;;  %328 = vst.msk [vmem:[#allocation2 + $0xb0] sm:$0xff] %vm129_vm1, %v292_v17 }
  0xed   :  { %423 = vst [vmem:[%s816_s3 + $0x30] sm:$0xff] %v422_v18  ;;  %451 = vst [vmem:[%s816_s3 + $0xa0] sm:$0xff] %v450_v19  ;;  %v238_v22 = vpop.f32.mrf.mxu0  ;;  %v294_v23 = vpop.f32.mrf.mxu1 }
  0xee   :  { %v239_v24 = vadd.f32 %v686_v16, %v238_v22  ;;  %v295_v25 = vadd.f32 %v686_v16, %v294_v23 }
  0xef   :  { %v536_v28 = vpop.f32.mrf.mxu0  ;;  %v564_v29 = vpop.f32.mrf.mxu1 }
  0xf0   :  { %v424_v26 = vld [vmem:[#allocation2 + $0x38] sm:$0xff]  ;;  %v452_v27 = vld [vmem:[#allocation2 + $0xa8] sm:$0xff]  ;;  %315 = vst.msk [vmem:[#allocation2 + $0x48] sm:$0xff] %vm129_vm1, %v239_v24  ;;  %329 = vst.msk [vmem:[#allocation2 + $0xb8] sm:$0xff] %vm129_vm1, %v295_v25 }
  0xf1   :  { %425 = vst [vmem:[%s816_s3 + $0x38] sm:$0xff] %v424_v26  ;;  %453 = vst [vmem:[%s816_s3 + $0xa8] sm:$0xff] %v452_v27  ;;  %v243_v30 = vpop.f32.mrf.mxu0  ;;  %v299_v31 = vpop.f32.mrf.mxu1 }
  0xf2   :  { %v244_v32 = vadd.f32 %v686_v16, %v243_v30  ;;  %v300_v33 = vadd.f32 %v686_v16, %v299_v31 }
  0xf3   :  { %v426_v34 = vld [vmem:[#allocation2 + $0x40] sm:$0xff]  ;;  %v454_v35 = vld [vmem:[#allocation2 + $0xb0] sm:$0xff]  ;;  %v539_v36 = vpop.f32.mrf.mxu0  ;;  %v567_v37 = vpop.f32.mrf.mxu1 }
  0xf4   :  { %427 = vst [vmem:[%s816_s3 + $0x40] sm:$0xff] %v426_v34  ;;  %455 = vst [vmem:[%s816_s3 + $0xb0] sm:$0xff] %v454_v35 }
  0xf5   :  { %316 = vst.msk [vmem:[#allocation2 + $0x50] sm:$0xff] %vm129_vm1, %v244_v32  ;;  %330 = vst.msk [vmem:[#allocation2 + $0xc0] sm:$0xff] %vm129_vm1, %v300_v33  ;;  %v246_v38 = vpop.f32.mrf.mxu0  ;;  %v302_v39 = vpop.f32.mrf.mxu1 }
  0xf6   :  { %v247_v40 = vadd.f32 %v686_v16, %v246_v38 }
  0xf7   :  { %v428_v41 = vld [vmem:[#allocation2 + $0x48] sm:$0xff]  ;;  %v456_v42 = vld [vmem:[#allocation2 + $0xb8] sm:$0xff]  ;;  %v540_v43 = vpop.f32.mrf.mxu0  ;;  %v568_v44 = vpop.f32.mrf.mxu1 }
  0xf8   :  { %429 = vst [vmem:[%s816_s3 + $0x48] sm:$0xff] %v428_v41  ;;  %457 = vst [vmem:[%s816_s3 + $0xb8] sm:$0xff] %v456_v42 }
  0xf9   :  { %317 = vst.msk [vmem:[#allocation2 + $0x58] sm:$0xff] %vm129_vm1, %v247_v40  ;;  %v251_v45 = vpop.f32.mrf.mxu0 }
  0xfa   :  { %v252_v46 = vadd.f32 %v686_v16, %v251_v45 }
  0xfb   :  { %v543_v49 = vpop.f32.mrf.mxu0 }
  0xfc   :  { %v430_v47 = vld [vmem:[#allocation2 + $0x50] sm:$0xff]  ;;  %v458_v48 = vld [vmem:[#allocation2 + $0xc0] sm:$0xff]  ;;  %318 = vst.msk [vmem:[#allocation2 + $0x60] sm:$0xff] %vm129_vm1, %v252_v46 }
  0xfd   :  { %431 = vst [vmem:[%s816_s3 + $0x50] sm:$0xff] %v430_v47  ;;  %459 = vst [vmem:[%s816_s3 + $0xc0] sm:$0xff] %v458_v48  ;;  %v254_v50 = vpop.f32.mrf.mxu0 }
  0xfe   :  { %v255_v51 = vadd.f32 %v686_v16, %v254_v50 }
  0xff   :  { %v544_v53 = vpop.f32.mrf.mxu0 }
 0x100   :  { %v432_v52 = vld [vmem:[#allocation2 + $0x58] sm:$0xff]  ;;  %319 = vst.msk [vmem:[#allocation2 + $0x68] sm:$0xff] %vm129_vm1, %v255_v51 }
 0x101   :  { %433 = vst [vmem:[%s816_s3 + $0x58] sm:$0xff] %v432_v52 }
 0x103   :  { %v434_v54 = vld [vmem:[#allocation2 + $0x60] sm:$0xff] }
 0x104   :  { %435 = vst [vmem:[%s816_s3 + $0x60] sm:$0xff] %v434_v54 }
 0x107   :  { %v436_v55 = vld [vmem:[#allocation2 + $0x68] sm:$0xff] }
 0x108   :  { %437 = vst [vmem:[%s816_s3 + $0x68] sm:$0xff] %v436_v55 }

</bundles_post_ra>
